<compile_context>
chip_gen: v5e
topology: v5e:2x2
jax: 0.10.0
libtpu: 0.0.40
codegen_flags: <defaults>
</compile_context>

<pallas_src>
import functools

import jax
import jax.numpy as jnp
from jax.experimental import pallas as pl
from jax.experimental.pallas import tpu as pltpu


def _tv_kernel(x_ref, mw_ref, mh_ref, o_ref, *, w, hw, bc_tile, rows_tail,
               last_block):
    """One grid step: TV partial sum over a (bc_tile, h*w) slab of images.

    x_ref : (bc_tile, hw) native-dtype block, one flattened image per row.
    mw_ref: (1, hw) f32 0/1 mask -- zero on each image's last column.
    mh_ref: (1, hw) f32 0/1 mask -- zero on each image's last image-row.
    o_ref : (1, 1, 128) f32 lane-dense per-block partial (same value in every
            lane; the wrapper reads lane 0 only).
    """
    x_nat = x_ref[...]
    # Roll on the native dtype (half the XLU traffic for bf16), cast after.
    xr_nat = pltpu.roll(x_nat, shift=hw - 1, axis=1)   # x_r[j] = x[j + 1]
    xd_nat = pltpu.roll(x_nat, shift=hw - w, axis=1)   # x_d[j] = x[j + w]
    x = x_nat.astype(jnp.float32)

    # Boundary masks kill the wrapped lanes of each roll; 1 mul each (no iota,
    # no integer mod, no select on the hot path).
    dw = (xr_nat.astype(jnp.float32) - x) * mw_ref[...]
    dh = (xd_nat.astype(jnp.float32) - x) * mh_ref[...]
    contrib = dh * dh + dw * dw

    ones = jnp.ones(o_ref.shape, jnp.float32)

    if rows_tail == bc_tile:
        # b*c divides evenly into blocks: no tail handling anywhere.
        o_ref[...] = jnp.sum(contrib) * ones
    else:
        # Ragged last block: its trailing rows contain unspecified (OOB) data.
        # Only the last grid step pays for the row mask (pl.when gate), and
        # jnp.where (not multiply) is used so garbage inf/nan cannot leak in.
        is_last = pl.program_id(0) == last_block

        @pl.when(jnp.logical_not(is_last))
        def _():
            o_ref[...] = jnp.sum(contrib) * ones

        @pl.when(is_last)
        def _():
            row = jax.lax.broadcasted_iota(jnp.int32, contrib.shape, 0)
            o_ref[...] = jnp.sum(jnp.where(row < rows_tail, contrib, 0.0)) * ones


def tv_loss(x, *, target_block_bytes=None):
    """x: float array [b, c, h, w] -> scalar float32 TV loss.

    Matches the given PyTorch TVLoss.forward: (h_tv + w_tv) / (b*c*h*w).
    """
    b, c, h, w = x.shape
    bc, hw = b * c, h * w
    itemsize = x.dtype.itemsize

    # Zero-copy repack: one flattened image per row; the lane (minor) axis is
    # h*w, so loads / VPU work are lane-dense even when w < 128, and the +1 /
    # +w rolls never mix pixels from different images.
    xf = x.reshape(bc, hw)

    # Precomputed 0/1 boundary masks (VMEM-resident across the whole grid):
    #   mask_w: zero on each image's last column   (kills wrap of the +1 roll)
    #   mask_h: zero on each image's last image row (kills wrap of the +w roll)
    pos = jnp.arange(hw, dtype=jnp.int32)
    mask_w = (pos % w != w - 1).astype(jnp.float32).reshape(1, hw)
    mask_h = (pos < (h - 1) * w).astype(jnp.float32).reshape(1, hw)

    # ---- generation-aware sizing -------------------------------------------
    vmem_cap = 64 * 2 ** 20            # conservative default (v7x: 64 MiB/TC)
    try:
        info = pltpu.get_tpu_info()
        vmem_cap = int(getattr(info, "vmem_capacity_bytes", vmem_cap))
    except Exception:
        pass
    if target_block_bytes is None:
        # Bigger blocks on v5e/v6e (128 MiB VMEM) to amortize per-step
        # overhead further; stay lean on v7x (64 MiB VMEM, double-buffered).
        target_block_bytes = 12 * 2 ** 20 if vmem_cap > 80 * 2 ** 20 else 6 * 2 ** 20

    # Native sublane tile for the input dtype: 8 (f32) / 16 (bf16) / 32 (int8).
    sublane = 8 * max(1, 4 // itemsize)
    slice_bytes = hw * itemsize
    min_blocks = 2                     # >= 2 grid steps -> both v7x TCs get work

    if bc <= sublane:
        bc_tile = bc                   # block dim == full array dim: always legal
    else:
        rows = max(1, target_block_bytes // max(slice_bytes, 1))
        rows = min(rows, bc)
        rows = min(rows, max(sublane, -(-bc // min_blocks)))   # keep >= 2 blocks
        if rows >= sublane:
            rows = (rows // sublane) * sublane                 # sublane-aligned
        else:
            # Huge per-image slices: keep the native sublane tile anyway.
            # TODO(synk): images with slice_bytes >> target_block_bytes should
            # get a second grid axis over h*w with a 1-row halo instead.
            rows = sublane
        bc_tile = rows
    num_blocks = pl.cdiv(bc, bc_tile)
    rows_tail = bc - (num_blocks - 1) * bc_tile   # ragged tail handled in-kernel

    block_bytes = bc_tile * slice_bytes
    mask_bytes = 2 * 8 * hw * 4        # two (1, hw) f32 masks, 8-sublane padded
    vmem_limit_bytes = int(
        min(vmem_cap * 3 // 4,
            max(32 * 2 ** 20, 4 * block_bytes + mask_bytes + (2 << 20))))

    kernel = functools.partial(
        _tv_kernel, w=w, hw=hw, bc_tile=bc_tile,
        rows_tail=rows_tail, last_block=num_blocks - 1)

    partials = pl.pallas_call(
        kernel,
        out_shape=jax.ShapeDtypeStruct((num_blocks, 1, 128), jnp.float32),
        grid_spec=pltpu.PrefetchScalarGridSpec(
            num_scalar_prefetch=0,
            grid=(num_blocks,),
            in_specs=[
                pl.BlockSpec((bc_tile, hw), lambda i: (i, 0)),
                pl.BlockSpec((1, hw), lambda i: (0, 0)),   # resident, no re-DMA
                pl.BlockSpec((1, hw), lambda i: (0, 0)),   # resident, no re-DMA
            ],
            out_specs=pl.BlockSpec((1, 1, 128), lambda i: (i, 0, 0)),
        ),
        compiler_params=pltpu.CompilerParams(
            # Per-block partial outputs -> no cross-step dependency; "parallel"
            # lets both v7x TensorCores run.
            dimension_semantics=("parallel",),
            vmem_limit_bytes=vmem_limit_bytes,
        ),
        cost_estimate=pl.CostEstimate(
            flops=8 * bc * hw,
            transcendentals=0,
            bytes_accessed=int(bc * hw * itemsize) + 2 * hw * 4
            + num_blocks * 128 * 4,
        ),
    )(xf, mask_w, mask_h)

    return (jnp.sum(partials[:, 0, 0]) / jnp.float32(bc * hw)).astype(jnp.float32)


def tv_loss_ref(x):
    """Pure-JAX reference mirroring the PyTorch forward exactly."""
    b, c, h, w = x.shape
    xf = x.astype(jnp.float32)
    h_tv = jnp.sum(jnp.square(xf[:, :, 1:, :] - xf[:, :, : h - 1, :]))
    w_tv = jnp.sum(jnp.square(xf[:, :, :, 1:] - xf[:, :, :, : w - 1]))
    return (h_tv + w_tv) / (b * c * h * w)


if __name__ == "__main__":
    key = jax.random.PRNGKey(0)
    b, c, h, w = 2, 3, 16, 16  # RGB image batch, pixel values in [0, 1]
    x = jax.random.uniform(key, (b, c, h, w), dtype=jnp.float32)

    out = jax.block_until_ready(tv_loss(x))
    ref = tv_loss_ref(x)
    assert out.shape == ()
    assert jnp.allclose(out, ref, rtol=2e-5, atol=1e-6), (out, ref)

    # bf16 input path: no pre-cast in the wrapper (HBM bytes halved); rolls run
    # on packed bf16 and the f32 cast happens on-chip after the roll.
    xb = x.astype(jnp.bfloat16)
    out_b = jax.block_until_ready(tv_loss(xb))
    ref_b = tv_loss_ref(xb)
    assert jnp.allclose(out_b, ref_b, rtol=2e-5, atol=1e-6), (out_b, ref_b)

    print("KERNEL_OK")
</pallas_src>

<mosaic_0001>
module attributes {stable_mosaic.version = 11 : i64} {
  func.func @_tv_kernel(%arg0: i32, %arg1: memref<6x256xf32, #tpu.memory_space<vmem>>, %arg2: memref<1x256xf32, #tpu.memory_space<vmem>>, %arg3: memref<1x256xf32, #tpu.memory_space<vmem>>, %arg4: memref<1x1x128xf32, #tpu.memory_space<vmem>>) attributes {dimension_semantics = [#tpu.dimension_semantics<parallel>], iteration_bounds = array<i64: 1>, scalar_prefetch = 0 : i64, scratch_operands = 0 : i64, tpu.core_type = #tpu.core_type<tc>, window_params = [{transform_indices = @transform_0, window_bounds = array<i64: 6, 256>}, {pipeline_mode = #tpu.pipeline_mode<synchronous>, transform_indices = @transform_1, window_bounds = array<i64: 1, 256>}, {pipeline_mode = #tpu.pipeline_mode<synchronous>, transform_indices = @transform_2, window_bounds = array<i64: 1, 256>}, {transform_indices = @transform_3, window_bounds = array<i64: 1, 1, 128>}]} {
    %c0 = arith.constant 0 : index
    %c0_0 = arith.constant 0 : index
    %0 = vector.load %arg1[%c0, %c0_0] : memref<6x256xf32, #tpu.memory_space<vmem>>, vector<6x256xf32>
    %c255_i32 = arith.constant 255 : i32
    %1 = tpu.dynamic_rotate %0 by %c255_i32 dim 1 : vector<6x256xf32>, i32 -> vector<6x256xf32>
    %c240_i32 = arith.constant 240 : i32
    %2 = tpu.dynamic_rotate %0 by %c240_i32 dim 1 : vector<6x256xf32>, i32 -> vector<6x256xf32>
    %3 = arith.subf %1, %0 : vector<6x256xf32>
    %c0_1 = arith.constant 0 : index
    %c0_2 = arith.constant 0 : index
    %4 = vector.load %arg2[%c0_1, %c0_2] : memref<1x256xf32, #tpu.memory_space<vmem>>, vector<1x256xf32>
    %5 = vector.broadcast %4 : vector<1x256xf32> to vector<6x256xf32>
    %6 = arith.mulf %3, %5 : vector<6x256xf32>
    %7 = arith.subf %2, %0 : vector<6x256xf32>
    %c0_3 = arith.constant 0 : index
    %c0_4 = arith.constant 0 : index
    %8 = vector.load %arg3[%c0_3, %c0_4] : memref<1x256xf32, #tpu.memory_space<vmem>>, vector<1x256xf32>
    %9 = vector.broadcast %8 : vector<1x256xf32> to vector<6x256xf32>
    %10 = arith.mulf %7, %9 : vector<6x256xf32>
    %11 = arith.mulf %10, %10 : vector<6x256xf32>
    %12 = arith.mulf %6, %6 : vector<6x256xf32>
    %13 = arith.addf %11, %12 : vector<6x256xf32>
    %cst = arith.constant 1.000000e+00 : f32
    %14 = vector.broadcast %cst : f32 to vector<1x1x128xf32>
    %15 = vector.shape_cast %13 : vector<6x256xf32> to vector<1x6x256xf32>
    %cst_5 = arith.constant dense<0.000000e+00> : vector<1xf32>
    %16 = vector.multi_reduction <add>, %15, %cst_5 [1, 2] : vector<1x6x256xf32> to vector<1xf32>
    %17 = vector.shape_cast %16 : vector<1xf32> to vector<1x1x1xf32>
    %18 = vector.extract %17[0, 0, 0] : f32 from vector<1x1x1xf32>
    %19 = vector.broadcast %18 : f32 to vector<1x1x128xf32>
    %20 = arith.mulf %19, %14 : vector<1x1x128xf32>
    %c0_6 = arith.constant 0 : index
    %c0_7 = arith.constant 0 : index
    %c0_8 = arith.constant 0 : index
    %21 = vector.load %arg4[%c0_6, %c0_7, %c0_8] : memref<1x1x128xf32, #tpu.memory_space<vmem>>, vector<1x1x128xf32>
    tpu.vector_store %arg4[%c0_6, %c0_7, %c0_8], %20 {strides = array<i32>} : memref<1x1x128xf32, #tpu.memory_space<vmem>>, vector<1x1x128xf32>,
    return
  }
  func.func @transform_0(%arg0: i32) -> (i32, i32) {
    %c0_i32 = arith.constant 0 : i32
    %c0_i32_0 = arith.constant 0 : i32
    return %arg0, %c0_i32 : i32, i32
  }
  func.func @transform_1(%arg0: i32) -> (i32, i32) {
    %c0_i32 = arith.constant 0 : i32
    %c0_i32_0 = arith.constant 0 : i32
    %c0_i32_1 = arith.constant 0 : i32
    return %c0_i32, %c0_i32_0 : i32, i32
  }
  func.func @transform_2(%arg0: i32) -> (i32, i32) {
    %c0_i32 = arith.constant 0 : i32
    %c0_i32_0 = arith.constant 0 : i32
    %c0_i32_1 = arith.constant 0 : i32
    return %c0_i32, %c0_i32_0 : i32, i32
  }
  func.func @transform_3(%arg0: i32) -> (i32, i32, i32) {
    %c0_i32 = arith.constant 0 : i32
    %c0_i32_0 = arith.constant 0 : i32
    %c0_i32_1 = arith.constant 0 : i32
    return %arg0, %c0_i32, %c0_i32_0 : i32, i32, i32
  }
}

</mosaic_0001>

<bundles_post_ra>
// kernel: tpu_custom_call.1
= control target key start
LH: loop header
LB: loop body
LE: loop exit
PB: predicated region body
PF: predicated region fallthrough
CT: control target
= control target key end

     0   :  { %8 = vsyncpa [#allocation3], 0  ;;  %s281_s0 = inlined_call_operand.hbm [shape: f32[6,256], index: 0, kind: input, shape index: {}]   ;;  %s282_s1 = inlined_call_operand.hbm [shape: f32[1,256], index: 1, kind: input, shape index: {}]   ;;  %s283_s2 = inlined_call_operand.hbm [shape: f32[1,256], index: 2, kind: input, shape index: {}]   ;;  %s284_s3 = inlined_call_operand.hbm [shape: f32[1,1,128], index: 3, kind: output, shape index: {}]  }
   0x1   :  { %9 = vsyncpa [#allocation6], 0  ;;  %s27_s14 = sshll.u32 %s282_s1, 4  ;;  %s28_s14 = int_to_ptr.hbm [resolvable:$true] %s27_s14 }
   0x2   :  { %10 = vsyncpa [#allocation4], 0  ;;  %s243_s15 = smov [#allocation5]   ;;  %s16_s19 = sshll.u32 %s281_s0, 4  ;;  %s17_s19 = int_to_ptr.hbm [resolvable:$true] %s16_s19 }
   0x3   :  { %s29_s16 = sshll.u32 %s243_s15, 4  ;;  %s244_s20 = smov [#allocation2]   ;;  %s30_s16 = int_to_ptr.vmem [resolvable:$true] %s29_s16 }
   0x4   :  { %32 = dma.hbm_to_vmem [thread:$0]  %s28_s14, 32, %s30_s16, [#allocation6]  }
   0x5   :  { %s18_s21 = sshll.u32 %s244_s20, 4  ;;  %s38_s24 = sshll.u32 %s283_s2, 4  ;;  %s19_s21 = int_to_ptr.vmem [resolvable:$true] %s18_s21  ;;  %s39_s24 = int_to_ptr.hbm [resolvable:$true] %s38_s24 }
   0x6   :  { %21 = dma.hbm_to_vmem [thread:$0]  %s17_s19, 256, %s19_s21, [#allocation3]  }
   0x7   :  { %s245_s1 = smov [#allocation7]  }
   0x8   :  { %s40_s25 = sshll.u32 %s245_s1, 4  ;;  %s41_s25 = int_to_ptr.vmem [resolvable:$true] %s40_s25 }
   0x9   :  { %43 = dma.hbm_to_vmem [thread:$0]  %s39_s24, 32, %s41_s25, [#allocation6]  }
   0xa   :  { %237 = dma.done.wait [#allocation3], 256  }
   0xb   :  { %238 = vsyncadd [#allocation3], 4294967040 }
   0xc   :  { %239 = dma.done.wait [#allocation6], 64  }
   0xd   :  { %240 = vsyncadd [#allocation6], 4294967232  ;;  %v56_v0 = vld [vmem:[#allocation2] sm:$0x3f]  ;;  %s246_s0 = smov 112   ;;  %s247_s26 = smov 127   ;;  %v62_v2 = vlaneseq }
   0xe   :  { %67 = vrot.lane.b32.xlu1 %v56_v0, %s246_s0  ;;  %58 = vrot.lane.b32.xlu0 %v56_v0, %s247_s26  ;;  %v57_v1 = vld [vmem:[#allocation2 + $0x8] sm:$0x3f]  ;;  %v86_v6 = vld [vmem:[#allocation7] sm:$0x3]  ;;  %v76_v7 = vld [vmem:[#allocation5] sm:$0x3] }
   0xf   :  { %v63_v5 = vand.u32 127, %v62_v2  ;;  %v88_v8 = vperm.slane %v86_v6, 0  ;;  %v89_v9 = vperm.slane %v86_v6, 1  ;;  %v78_v11 = vperm.slane %v76_v7, 0  ;;  %s248_s2 = smov [#allocation8]   ;;  %s122_s30 = sshll.u32 %s284_s3, 4  ;;  %s123_s30 = int_to_ptr.hbm [resolvable:$true] %s122_s30 }
  0x10   :  { %v79_v12 = vperm.slane %v76_v7, 1  ;;  %vm100_vm2 = vcmask 1045504   ;;  %s120_s27 = sshll.u32 %s248_s2, 4  ;;  %s121_s27 = int_to_ptr.vmem [resolvable:$true] %s120_s27 }
  0x11   :  { %vm71_vm0 = vcmp.lt.s32.totalorder %v63_v5, 112  ;;  %vm64_vm1 = vcmp.lt.s32.totalorder %v63_v5, 127 }
  0x16   :  { %69 = vrot.lane.b32.xlu1 %v57_v1, %s246_s0  ;;  %60 = vrot.lane.b32.xlu0 %v57_v1, %s247_s26 }
  0x80   :  { %v68_v3 = vpop.permute.xlu1 %67  ;;  %v59_v4 = vpop.permute.xlu0 %58 }
  0x88   :  { %v70_v10 = vpop.permute.xlu1 %69  ;;  %v61_v13 = vpop.permute.xlu0 %60 }
  0x89   :  { %v72_v14 = vsel %vm71_vm0, %v68_v3, %v70_v10  ;;  %v73_v15 = vsel %vm71_vm0, %v70_v10, %v68_v3  ;;  %v65_v16 = vsel %vm64_vm1, %v59_v4, %v61_v13  ;;  %v66_v17 = vsel %vm64_vm1, %v61_v13, %v59_v4 }
  0x8a   :  { %v84_v18 = vsub.f32 %v72_v14, %v56_v0  ;;  %v85_v19 = vsub.f32 %v73_v15, %v57_v1  ;;  %v74_v20 = vsub.f32 %v65_v16, %v56_v0  ;;  %v75_v21 = vsub.f32 %v66_v17, %v57_v1 }
  0x8c   :  { %v92_v22 = vmul.f32 %v88_v8, %v84_v18  ;;  %v93_v23 = vmul.f32 %v89_v9, %v85_v19  ;;  %v82_v24 = vmul.f32 %v78_v11, %v74_v20  ;;  %v83_v25 = vmul.f32 %v79_v12, %v75_v21 }
  0x8e   :  { %v94_v26 = vmul.f32 %v92_v22, %v92_v22  ;;  %v95_v27 = vmul.f32 %v93_v23, %v93_v23  ;;  %v96_v28 = vmul.f32 %v82_v24, %v82_v24  ;;  %v97_v29 = vmul.f32 %v83_v25, %v83_v25 }
  0x90   :  { %v98_v30 = vadd.f32 %v96_v28, %v94_v26  ;;  %v99_v31 = vadd.f32 %v97_v29, %v95_v27 }
  0x92   :  { %v101_v32 = vsel %vm100_vm2, %v98_v30, 0.0  ;;  %v102_v33 = vsel %vm100_vm2, %v99_v31, 0.0 }
  0x93   :  { %v103_v34 = vadd.f32 %v102_v33, %v101_v32 }
  0x95   :  { %104 = vadd.xlane.f32.xlu2 %v103_v34 }
 0x108   :  { %v105_v35 = vpop.xlane.xlu2 %104 }
 0x109   :  { %v106_v36 = vrot.slane %v105_v35, 4 }
 0x10b   :  { %v107_v37 = vadd.f32 %v106_v36, %v105_v35 }
 0x10d   :  { %v108_v38 = vrot.slane %v107_v37, 2 }
 0x10f   :  { %v109_v39 = vadd.f32 %v108_v38, %v107_v37 }
 0x111   :  { %v110_v40 = vrot.slane %v109_v39, 1 }
 0x113   :  { %v111_v41 = vadd.f32 %v110_v40, %v109_v39 }
 0x115   :  { %133 = vpush %v111_v41 }
 0x146   :  { %s134_s4 = spop %133 }
 0x147   :  { %v113_v42 = vstv %s134_s4 }
 0x148   :  { %114 = vst [vmem:[#allocation8] sm:$0x1] %v113_v42 }
 0x149   :  { %125 = dma.vmem_to_hbm [thread:$0]  %s121_s27, 16, %s123_s30, [#allocation4]  }
 0x14a   :  { %241 = dma.done.wait [#allocation4], 16  }
 0x14b   :  { %242 = vsyncadd [#allocation4], 4294967280 }
 0x14c   :  { %130 = vsyncpa [#allocation3], 1 }
 0x14d   :  { %131 = vsyncpa [#allocation6], 1 }
 0x14e   :  { %132 = vsyncpa [#allocation4], 1 }

</bundles_post_ra>
